<compile_context>
chip_gen: v7x
topology: tpu7x:2x2x1
jax: 0.10.0
libtpu: 0.0.40
codegen_flags: <defaults>
</compile_context>

<pallas_src>
import jax
import jax.numpy as jnp
from jax.experimental import pallas as pl
from jax.experimental.pallas import tpu as pltpu

HIDDEN = 128
OUT_PAD = 128  # lane-dense padded width of the final layer output


def mlp_kernel(x_ref, w1_ref, b1_ref, w2_ref, b2_ref, w3_ref, b3_ref, o_ref):
    # x_ref: (TB, D) bf16 | w*: (in, out) bf16 | b*: (1, out) f32 | o_ref: (TB, OUT_PAD) f32
    h1 = jnp.dot(x_ref[...], w1_ref[...], preferred_element_type=jnp.float32)
    h1 = jnp.maximum(h1 + b1_ref[...], 0.0)
    h2 = jnp.dot(h1.astype(jnp.bfloat16), w2_ref[...],
                 preferred_element_type=jnp.float32)
    h2 = jnp.maximum(h2 + b2_ref[...], 0.0)
    h3 = jnp.dot(h2.astype(jnp.bfloat16), w3_ref[...],
                 preferred_element_type=jnp.float32)
    o_ref[...] = (h3 + b3_ref[...]).astype(o_ref.dtype)


def prepare_params(params, out_pad=OUT_PAD):
    """One-time conversion of PyTorch-style (out,in) f32 params to kernel layout:
    (in,out) bf16 weights, (1,out) f32 biases, final layer zero-padded to out_pad."""
    w1, b1, w2, b2, w3, b3 = params
    out_dim = w3.shape[0]
    assert out_dim <= out_pad
    w3p = jnp.zeros((out_pad, w3.shape[1]), w3.dtype).at[:out_dim].set(w3)
    b3p = jnp.zeros((out_pad,), b3.dtype).at[:out_dim].set(b3)
    return (
        w1.T.astype(jnp.bfloat16), b1.reshape(1, -1).astype(jnp.float32),
        w2.T.astype(jnp.bfloat16), b2.reshape(1, -1).astype(jnp.float32),
        w3p.T.astype(jnp.bfloat16), b3p.reshape(1, -1).astype(jnp.float32),
    )


def _pick_tb(B, target=512):
    """Batch tile: <= B (so no jnp.pad), multiple of 8 when B > 8, capped at
    `target`, and ~B/2 for mid-size B so the grid has >=2 tiles (v7x megacore)."""
    if B <= 8:
        return max(B, 1)           # single full-batch block (full-dim rule)
    half = 8 * pl.cdiv(B, 16)      # ceil(B/2) rounded up to a multiple of 8 (<= B)
    return min(target, half)


def mlp_forward(x, kparams, num_class, num_output, *, tb=None):
    """x: (B, C, H, W). kparams: output of prepare_params. Returns (B, num_class, num_output)."""
    B = x.shape[0]
    # bf16 input stream; the reshape+cast is fused into the pallas_call input
    # (allow_input_fusion below), so there is no standalone cast pass over HBM.
    x_flat = x.reshape(B, -1).astype(jnp.bfloat16)   # same ordering as torch .view(B, -1)
    D = x_flat.shape[1]
    out_dim = num_class * num_output
    w1t, b1, w2t, b2, w3t, b3 = kparams
    out_pad = w3t.shape[1]

    if tb is None:
        tb = _pick_tb(B)
    tb = max(1, min(tb, B))
    num_tiles = pl.cdiv(B, tb)     # ragged last tile handled by Pallas edge blocks

    flops = 2 * B * (D * HIDDEN + HIDDEN * HIDDEN + HIDDEN * out_pad)
    bytes_accessed = (
        x_flat.size * x_flat.dtype.itemsize
        + sum(a.size * a.dtype.itemsize for a in (w1t, b1, w2t, b2, w3t, b3))
        + B * out_pad * 4
    )

    out = pl.pallas_call(
        mlp_kernel,
        out_shape=jax.ShapeDtypeStruct((B, out_pad), jnp.float32),
        grid=(num_tiles,),
        in_specs=[
            pl.BlockSpec((tb, D), lambda i: (i, 0)),          # x tile (pipelined)
            pl.BlockSpec((D, HIDDEN), lambda i: (0, 0)),      # weights: VMEM-resident
            pl.BlockSpec((1, HIDDEN), lambda i: (0, 0)),
            pl.BlockSpec((HIDDEN, HIDDEN), lambda i: (0, 0)),
            pl.BlockSpec((1, HIDDEN), lambda i: (0, 0)),
            pl.BlockSpec((HIDDEN, out_pad), lambda i: (0, 0)),
            pl.BlockSpec((1, out_pad), lambda i: (0, 0)),
        ],
        out_specs=pl.BlockSpec((tb, out_pad), lambda i: (i, 0)),
        compiler_params=pltpu.CompilerParams(
            dimension_semantics=("parallel",),                # 2-TC shard on v7x
            allow_input_fusion=[True, False, False, False, False, False, False],
        ),
        cost_estimate=pl.CostEstimate(
            flops=flops, transcendentals=0, bytes_accessed=bytes_accessed),
    )(x_flat, w1t, b1, w2t, b2, w3t, b3)

    out = out[:, :out_dim]                                    # drop out-column padding
    return out.reshape(B, num_class, num_output)


def init_params(key, in_dim, hidden=HIDDEN, out_dim=15):
    """Deterministic PyTorch-style (out, in) weights + biases (f32 master copy)."""
    ks = jax.random.split(key, 6)

    def lin(kw, kb, fan_in, fan_out):
        bound = 1.0 / jnp.sqrt(fan_in)
        w = jax.random.uniform(kw, (fan_out, fan_in), jnp.float32, -bound, bound)
        b = jax.random.uniform(kb, (fan_out,), jnp.float32, -bound, bound)
        return w, b

    w1, b1 = lin(ks[0], ks[1], in_dim, hidden)
    w2, b2 = lin(ks[2], ks[3], hidden, hidden)
    w3, b3 = lin(ks[4], ks[5], hidden, out_dim)
    return (w1, b1, w2, b2, w3, b3)


if __name__ == "__main__":
    # Shapes consistent with the module: num_channel=4, img_size=16 -> D = 4*16*16 = 1024
    B, C, H, W = 2, 4, 16, 16
    num_class, num_output = 5, 3
    D = C * H * W

    key = jax.random.PRNGKey(0)
    kx, kp = jax.random.split(key)
    x = jax.random.normal(kx, (B, C, H, W), jnp.float32)
    params = init_params(kp, D, hidden=HIDDEN, out_dim=num_class * num_output)
    kparams = prepare_params(params)   # one-time transpose / bf16 cast / out-dim pad

    fwd = jax.jit(lambda xx, kps: mlp_forward(xx, kps, num_class, num_output))
    y = fwd(x, kparams)
    jax.block_until_ready(y)

    # Reference check in plain f32 JAX (same math; tolerance relaxed for bf16 matmuls).
    w1, b1, w2, b2, w3, b3 = params
    xf = x.reshape(B, -1)
    r = jnp.maximum(xf @ w1.T + b1, 0.0)
    r = jnp.maximum(r @ w2.T + b2, 0.0)
    r = (r @ w3.T + b3).reshape(B, num_class, num_output)

    assert y.shape == (B, num_class, num_output)
    assert jnp.allclose(y, r, atol=2e-2, rtol=2e-2), float(jnp.max(jnp.abs(y - r)))

    print("KERNEL_OK")
</pallas_src>

<mosaic_0001>
module attributes {stable_mosaic.version = 11 : i64} {
  func.func @mlp_kernel(%arg0: i32, %arg1: memref<2x1024xbf16, #tpu.memory_space<vmem>>, %arg2: memref<1024x128xbf16, #tpu.memory_space<vmem>>, %arg3: memref<1x128xf32, #tpu.memory_space<vmem>>, %arg4: memref<128x128xbf16, #tpu.memory_space<vmem>>, %arg5: memref<1x128xf32, #tpu.memory_space<vmem>>, %arg6: memref<128x128xbf16, #tpu.memory_space<vmem>>, %arg7: memref<1x128xf32, #tpu.memory_space<vmem>>, %arg8: memref<2x128xf32, #tpu.memory_space<vmem>>) attributes {dimension_semantics = [#tpu.dimension_semantics<parallel>], iteration_bounds = array<i64: 1>, scalar_prefetch = 0 : i64, scratch_operands = 0 : i64, tpu.core_type = #tpu.core_type<tc>, window_params = [{transform_indices = @transform_0, window_bounds = array<i64: 2, 1024>}, {pipeline_mode = #tpu.pipeline_mode<synchronous>, transform_indices = @transform_1, window_bounds = array<i64: 1024, 128>}, {pipeline_mode = #tpu.pipeline_mode<synchronous>, transform_indices = @transform_2, window_bounds = array<i64: 1, 128>}, {pipeline_mode = #tpu.pipeline_mode<synchronous>, transform_indices = @transform_3, window_bounds = array<i64: 128, 128>}, {pipeline_mode = #tpu.pipeline_mode<synchronous>, transform_indices = @transform_4, window_bounds = array<i64: 1, 128>}, {pipeline_mode = #tpu.pipeline_mode<synchronous>, transform_indices = @transform_5, window_bounds = array<i64: 128, 128>}, {pipeline_mode = #tpu.pipeline_mode<synchronous>, transform_indices = @transform_6, window_bounds = array<i64: 1, 128>}, {transform_indices = @transform_7, window_bounds = array<i64: 2, 128>}]} {
    %c0 = arith.constant 0 : index
    %c0_0 = arith.constant 0 : index
    %0 = vector.load %arg1[%c0, %c0_0] : memref<2x1024xbf16, #tpu.memory_space<vmem>>, vector<2x1024xbf16>
    %c0_1 = arith.constant 0 : index
    %c0_2 = arith.constant 0 : index
    %1 = vector.load %arg2[%c0_1, %c0_2] : memref<1024x128xbf16, #tpu.memory_space<vmem>>, vector<1024x128xbf16>
    %cst = arith.constant dense<0.000000e+00> : vector<2x128xf32>
    %2 = tpu.matmul %0, %1, %cst {dimension_numbers = #tpu.dot_dimension_numbers<[1], [0], [0], [1], [0, 0, 1, 1], [], []>} : vector<2x1024xbf16>, vector<1024x128xbf16>, vector<2x128xf32> -> vector<2x128xf32>
    %c0_3 = arith.constant 0 : index
    %c0_4 = arith.constant 0 : index
    %3 = vector.load %arg3[%c0_3, %c0_4] : memref<1x128xf32, #tpu.memory_space<vmem>>, vector<1x128xf32>
    %4 = vector.broadcast %3 : vector<1x128xf32> to vector<2x128xf32>
    %5 = arith.addf %2, %4 : vector<2x128xf32>
    %cst_5 = arith.constant 0.000000e+00 : f32
    %6 = vector.broadcast %cst_5 : f32 to vector<2x128xf32>
    %7 = arith.maximumf %5, %6 : vector<2x128xf32>
    %8 = arith.truncf %7 : vector<2x128xf32> to vector<2x128xbf16>
    %c0_6 = arith.constant 0 : index
    %c0_7 = arith.constant 0 : index
    %9 = vector.load %arg4[%c0_6, %c0_7] : memref<128x128xbf16, #tpu.memory_space<vmem>>, vector<128x128xbf16>
    %cst_8 = arith.constant dense<0.000000e+00> : vector<2x128xf32>
    %10 = tpu.matmul %8, %9, %cst_8 {dimension_numbers = #tpu.dot_dimension_numbers<[1], [0], [0], [1], [0, 0, 1, 1], [], []>} : vector<2x128xbf16>, vector<128x128xbf16>, vector<2x128xf32> -> vector<2x128xf32>
    %c0_9 = arith.constant 0 : index
    %c0_10 = arith.constant 0 : index
    %11 = vector.load %arg5[%c0_9, %c0_10] : memref<1x128xf32, #tpu.memory_space<vmem>>, vector<1x128xf32>
    %12 = vector.broadcast %11 : vector<1x128xf32> to vector<2x128xf32>
    %13 = arith.addf %10, %12 : vector<2x128xf32>
    %cst_11 = arith.constant 0.000000e+00 : f32
    %14 = vector.broadcast %cst_11 : f32 to vector<2x128xf32>
    %15 = arith.maximumf %13, %14 : vector<2x128xf32>
    %16 = arith.truncf %15 : vector<2x128xf32> to vector<2x128xbf16>
    %c0_12 = arith.constant 0 : index
    %c0_13 = arith.constant 0 : index
    %17 = vector.load %arg6[%c0_12, %c0_13] : memref<128x128xbf16, #tpu.memory_space<vmem>>, vector<128x128xbf16>
    %cst_14 = arith.constant dense<0.000000e+00> : vector<2x128xf32>
    %18 = tpu.matmul %16, %17, %cst_14 {dimension_numbers = #tpu.dot_dimension_numbers<[1], [0], [0], [1], [0, 0, 1, 1], [], []>} : vector<2x128xbf16>, vector<128x128xbf16>, vector<2x128xf32> -> vector<2x128xf32>
    %c0_15 = arith.constant 0 : index
    %c0_16 = arith.constant 0 : index
    %19 = vector.load %arg7[%c0_15, %c0_16] : memref<1x128xf32, #tpu.memory_space<vmem>>, vector<1x128xf32>
    %20 = vector.broadcast %19 : vector<1x128xf32> to vector<2x128xf32>
    %21 = arith.addf %18, %20 : vector<2x128xf32>
    %c0_17 = arith.constant 0 : index
    %c0_18 = arith.constant 0 : index
    %22 = vector.load %arg8[%c0_17, %c0_18] : memref<2x128xf32, #tpu.memory_space<vmem>>, vector<2x128xf32>
    tpu.vector_store %arg8[%c0_17, %c0_18], %21 {strides = array<i32>} : memref<2x128xf32, #tpu.memory_space<vmem>>, vector<2x128xf32>,
    return
  }
  func.func @transform_0(%arg0: i32) -> (i32, i32) {
    %c0_i32 = arith.constant 0 : i32
    %c0_i32_0 = arith.constant 0 : i32
    return %arg0, %c0_i32 : i32, i32
  }
  func.func @transform_1(%arg0: i32) -> (i32, i32) {
    %c0_i32 = arith.constant 0 : i32
    %c0_i32_0 = arith.constant 0 : i32
    %c0_i32_1 = arith.constant 0 : i32
    return %c0_i32, %c0_i32_0 : i32, i32
  }
  func.func @transform_2(%arg0: i32) -> (i32, i32) {
    %c0_i32 = arith.constant 0 : i32
    %c0_i32_0 = arith.constant 0 : i32
    %c0_i32_1 = arith.constant 0 : i32
    return %c0_i32, %c0_i32_0 : i32, i32
  }
  func.func @transform_3(%arg0: i32) -> (i32, i32) {
    %c0_i32 = arith.constant 0 : i32
    %c0_i32_0 = arith.constant 0 : i32
    %c0_i32_1 = arith.constant 0 : i32
    return %c0_i32, %c0_i32_0 : i32, i32
  }
  func.func @transform_4(%arg0: i32) -> (i32, i32) {
    %c0_i32 = arith.constant 0 : i32
    %c0_i32_0 = arith.constant 0 : i32
    %c0_i32_1 = arith.constant 0 : i32
    return %c0_i32, %c0_i32_0 : i32, i32
  }
  func.func @transform_5(%arg0: i32) -> (i32, i32) {
    %c0_i32 = arith.constant 0 : i32
    %c0_i32_0 = arith.constant 0 : i32
    %c0_i32_1 = arith.constant 0 : i32
    return %c0_i32, %c0_i32_0 : i32, i32
  }
  func.func @transform_6(%arg0: i32) -> (i32, i32) {
    %c0_i32 = arith.constant 0 : i32
    %c0_i32_0 = arith.constant 0 : i32
    %c0_i32_1 = arith.constant 0 : i32
    return %c0_i32, %c0_i32_0 : i32, i32
  }
  func.func @transform_7(%arg0: i32) -> (i32, i32) {
    %c0_i32 = arith.constant 0 : i32
    %c0_i32_0 = arith.constant 0 : i32
    return %arg0, %c0_i32 : i32, i32
  }
}

</mosaic_0001>

<bundles_post_ra>
// kernel: _lambda_.1
= control target key start
LH: loop header
LB: loop body
LE: loop exit
PB: predicated region body
PF: predicated region fallthrough
CT: control target
= control target key end

     0   :  { %12 = vsyncpa [#allocation3], 0  ;;  %s1351_s24 = smov [#allocation2]   ;;  %s1503_s0 = inlined_call_operand.vmem [shape: bf16[2,1024], index: 0, kind: input, shape index: {}]   ;;  %s1504_s1 = inlined_call_operand.hbm [shape: bf16[1024,128], index: 1, kind: input, shape index: {}]   ;;  %s1505_s2 = inlined_call_operand.vmem [shape: f32[1,128], index: 2, kind: input, shape index: {}]   ;;  %s1506_s3 = inlined_call_operand.vmem [shape: bf16[128,128], index: 3, kind: input, shape index: {}]   ;;  %s1507_s4 = inlined_call_operand.vmem [shape: f32[1,128], index: 4, kind: input, shape index: {}]   ;;  %s1508_s5 = inlined_call_operand.vmem [shape: bf16[128,128], index: 5, kind: input, shape index: {}]   ;;  %s1509_s6 = inlined_call_operand.vmem [shape: f32[1,128], index: 6, kind: input, shape index: {}]   ;;  %s1510_s7 = inlined_call_operand.vmem [shape: f32[2,128], index: 7, kind: output, shape index: {}]  }
   0x1   :  { %s20_s25 = sshll.u32 %s1351_s24, 4  ;;  %s1327_s28 = scalar_lea.hbm %s1504_s1, 8192  ;;  %s21_s25 = int_to_ptr.vmem [resolvable:$true] %s20_s25 }
   0x2   :  { %p1328_p0 = scmp.ne.s32.totalorder %s1504_s1, %s1327_s28  ;;  %p1331_p1 = scmp.lt.u32.totalorder %s1327_s28, %s1504_s1 }
   0x4   :  { %p1333_p2 = pnand %p1331_p1, %p1328_p0 }
   0x6   :  { %1336 = shalt.err (!%p1333_p2)
}
   0x7   :  { %s1337_s10 = scalar_lea.vmem %s21_s25, 8192  ;;  %p1342_p4 = scmp.lt.s32.totalorder %s21_s25, %s21_s25 }
   0x8   :  { %p1338_p3 = scmp.ne.s32.totalorder %s21_s25, %s1337_s10  ;;  %p1343_p5 = scmp.lt.s32.totalorder %s1337_s10, %s1337_s10 }
   0xa   :  { %p1344_p6 = por %p1343_p5, %p1342_p4 }
   0xc   :  { %p1345_p7 = pnand %p1344_p6, %p1338_p3 }
   0xe   :  { %1348 = shalt.err (!%p1345_p7)
}
   0xf   :  { %s1352_s11 = smov 64   ;;  %s1353_s12 = smov 4  }
  0x10   :  { %26 = dma.hbm_to_vmem [thread:$0]  %s1504_s1, 8192, %s21_s25, [#allocation3], %s1352_s11, %s1352_s11, %s1353_s12  }
  0x11   :  { %1349 = dma.done.wait [#allocation3], 8192  }
  0x12   :  { %1350 = vsyncadd [#allocation3], 4294959104  ;;  %v1246_v0 = vld [vmem:[#allocation2 + $0x40] sm:$0xff]   ;;  %v1250_v4 = vld [vmem:[#allocation2 + $0x48] sm:$0xff]   ;;  %v1354_v22 = vmov 1966171168   ;;  %v182_v24 = vlaneseq }
  0x13   :  { %v1247_v1 = vld [vmem:[#allocation2 + $0xc0] sm:$0xff]   ;;  %1094 = vmatprep.subr.bf16.mxu0 %v1246_v0  ;;  %v1251_v5 = vld [vmem:[#allocation2 + $0xc8] sm:$0xff]   ;;  %v1254_v8 = vld [vmem:[#allocation2 + $0x50] sm:$0xff]   ;;  %v180_v23 = vunpack.c.l.s4 %v1354_v22  ;;  %vm1356_vm0 = vmmov 0  }
  0x14   :  { %v1248_v2 = vld [vmem:[#allocation2] sm:$0xff]   ;;  %1116 = vmatprep.subr.bf16.mxu1 %v1247_v1  ;;  %v1252_v6 = vld [vmem:[#allocation2 + $0x8] sm:$0xff]   ;;  %v1255_v9 = vld [vmem:[#allocation2 + $0xd0] sm:$0xff]   ;;  %v183_v30 = vshrl.u32 %v182_v24, 7 }
  0x15   :  { %v1249_v3 = vld [vmem:[#allocation2 + $0x80] sm:$0xff]   ;;  %1095 = vmatpush3.bf16.msra.mxu0 %v1248_v2  ;;  %v1253_v7 = vld [vmem:[#allocation2 + $0x88] sm:$0xff]   ;;  %v1256_v10 = vld [vmem:[#allocation2 + $0x10] sm:$0xff]   ;;  %v181_v29 = vunpack.c.0.s8 %v180_v23 }
  0x16   :  { %1117 = vmatpush3.bf16.msra.mxu1 %v1249_v3  ;;  %1096 = vmatprep.subr.bf16.mxu0 %v1250_v4  ;;  %v1257_v11 = vld [vmem:[#allocation2 + $0x90] sm:$0xff]   ;;  %v1258_v12 = vld [vmem:[#allocation2 + $0x58] sm:$0xff]   ;;  %v1262_v16 = vld [vmem:[#allocation2 + $0x60] sm:$0xff]  }
  0x17   :  { %1118 = vmatprep.subr.bf16.mxu1 %v1251_v5  ;;  %v1259_v13 = vld [vmem:[#allocation2 + $0xd8] sm:$0xff]   ;;  %v1263_v17 = vld [vmem:[#allocation2 + $0xe0] sm:$0xff]   ;;  %v1266_v20 = vld [vmem:[#allocation2 + $0x68] sm:$0xff]   ;;  %v1409_v35 = vsub.s32 %v181_v29, %v183_v30 }
  0x18   :  { %v1260_v14 = vld [vmem:[#allocation2 + $0x18] sm:$0xff]   ;;  %v1264_v18 = vld [vmem:[#allocation2 + $0x20] sm:$0xff]   ;;  %v1267_v21 = vld [vmem:[#allocation2 + $0xe8] sm:$0xff]  }
  0x19   :  { %1097 = vmatpush3.bf16.msra.mxu0 %v1252_v6  ;;  %v1261_v15 = vld [vmem:[#allocation2 + $0x98] sm:$0xff]   ;;  %v1265_v19 = vld [vmem:[#allocation2 + $0xa0] sm:$0xff]   ;;  %v1268_v25 = vld [vmem:[#allocation2 + $0x28] sm:$0xff]  }
  0x1a   :  { %1119 = vmatpush3.bf16.msra.mxu1 %v1253_v7  ;;  %1098 = vmatprep.subr.bf16.mxu0 %v1254_v8  ;;  %v1269_v26 = vld [vmem:[#allocation2 + $0xa8] sm:$0xff]   ;;  %v1270_v27 = vld [vmem:[#allocation2 + $0x70] sm:$0xff]   ;;  %v1274_v33 = vld [vmem:[#allocation2 + $0x78] sm:$0xff]  }
  0x1b   :  { %1120 = vmatprep.subr.bf16.mxu1 %v1255_v9  ;;  %v1271_v28 = vld [vmem:[#allocation2 + $0xf0] sm:$0xff]   ;;  %v1275_v34 = vld [vmem:[#allocation2 + $0xf8] sm:$0xff]   ;;  %v41_v38 = vld [vmem:[%s1503_s0] sm:$0xff] }
  0x1c   :  { %v1272_v31 = vld [vmem:[#allocation2 + $0x30] sm:$0xff]   ;;  %v1276_v36 = vld [vmem:[#allocation2 + $0x38] sm:$0xff]   ;;  %v178_v39 = vcombine.high %v41_v38, %v41_v38  ;;  %v185_v40 = vrot.slane %v41_v38, %v1409_v35  ;;  %v1279_v41 = vld [vmem:[#allocation2 + $0x140] sm:$0xff]  }
  0x1d   :  { %1099 = vmatpush3.bf16.msra.mxu0 %v1256_v10  ;;  %v1273_v32 = vld [vmem:[#allocation2 + $0xb0] sm:$0xff]   ;;  %v1277_v37 = vld [vmem:[#allocation2 + $0xb8] sm:$0xff]   ;;  %v1280_v42 = vld [vmem:[#allocation2 + $0x1c0] sm:$0xff]  }
  0x1e   :  { %1121 = vmatpush3.bf16.msra.mxu1 %v1257_v11  ;;  %1100 = vmatprep.subr.bf16.mxu0 %v1258_v12  ;;  %v193_v43 = vcombine.high %v185_v40, %v185_v40  ;;  %v201_v44 = vrot.slane %v185_v40, %v1409_v35  ;;  %v1417_v45 = vrot.slane %v178_v39, %v1409_v35  ;;  %v1281_v46 = vld [vmem:[#allocation2 + $0x100] sm:$0xff]   ;;  %v1283_v51 = vld [vmem:[#allocation2 + $0x148] sm:$0xff]   ;;  %v1287_v58 = vld [vmem:[#allocation2 + $0x150] sm:$0xff]  }
  0x1f   :  { %1122 = vmatprep.subr.bf16.mxu1 %v1259_v13  ;;  %v1282_v48 = vld [vmem:[#allocation2 + $0x180] sm:$0xff]   ;;  %v1284_v53 = vld [vmem:[#allocation2 + $0x1c8] sm:$0xff]   ;;  %v1288_v59 = vld [vmem:[#allocation2 + $0x1d0] sm:$0xff]  }
  0x20   :  { %v215_v47 = vrot.slane %v193_v43, %v1409_v35  ;;  %v194_v49 = vcombine.high %v1417_v45, %v1417_v45  ;;  %v223_v50 = vcombine.high %v201_v44, %v201_v44  ;;  %v1285_v55 = vld [vmem:[#allocation2 + $0x108] sm:$0xff]   ;;  %v1289_v60 = vld [vmem:[#allocation2 + $0x110] sm:$0xff]   ;;  %v1291_v62 = vld [vmem:[#allocation2 + $0x158] sm:$0xff]  }
  0x21   :  { %1101 = vmatpush3.bf16.msra.mxu0 %v1260_v14  ;;  %v1286_v56 = vld [vmem:[#allocation2 + $0x188] sm:$0xff]   ;;  %v1290_v61 = vld [vmem:[#allocation2 + $0x190] sm:$0xff]   ;;  %v1292_v63 = vld [vmem:[#allocation2 + $0x1d8] sm:$0xff]  }
  0x22   :  { %1123 = vmatpush3.bf16.msra.mxu1 %v1261_v15  ;;  %1102 = vmatprep.subr.bf16.mxu0 %v1262_v16  ;;  %v225_v52 = vcombine.high %v215_v47, %v215_v47  ;;  %v222_v54 = vrot.slane %v194_v49, %v1409_v35  ;;  %v1293_v0 = vld [vmem:[#allocation2 + $0x118] sm:$0xff]   ;;  %v1295_v2 = vld [vmem:[#allocation2 + $0x160] sm:$0xff]   ;;  %v1299_v6 = vld [vmem:[#allocation2 + $0x168] sm:$0xff]  }
  0x23   :  { %1124 = vmatprep.subr.bf16.mxu1 %v1263_v17  ;;  %651 = vmatprep.mubr.bf16.mxu0 %v215_v47  ;;  %v1294_v1 = vld [vmem:[#allocation2 + $0x198] sm:$0xff]   ;;  %v1296_v3 = vld [vmem:[#allocation2 + $0x1e0] sm:$0xff]   ;;  %v1300_v7 = vld [vmem:[#allocation2 + $0x1e8] sm:$0xff]  }
  0x24   :  { %691 = vmatprep.mubr.bf16.mxu1 %v225_v52  ;;  %v226_v57 = vcombine.high %v222_v54, %v222_v54  ;;  %v1297_v4 = vld [vmem:[#allocation2 + $0x120] sm:$0xff]   ;;  %v1301_v8 = vld [vmem:[#allocation2 + $0x128] sm:$0xff]   ;;  %v1303_v10 = vld [vmem:[#allocation2 + $0x170] sm:$0xff]  }
  0x25   :  { %1103 = vmatpush3.bf16.msra.mxu0 %v1264_v18  ;;  %v1298_v5 = vld [vmem:[#allocation2 + $0x1a0] sm:$0xff]   ;;  %v1302_v9 = vld [vmem:[#allocation2 + $0x1a8] sm:$0xff]   ;;  %v1304_v11 = vld [vmem:[#allocation2 + $0x1f0] sm:$0xff]   ;;  %v208_v18 = vrot.slane %v1417_v45, %v1409_v35 }
  0x26   :  { %1125 = vmatpush3.bf16.msra.mxu1 %v1265_v19  ;;  %1104 = vmatprep.subr.bf16.mxu0 %v1266_v20  ;;  %v1305_v12 = vld [vmem:[#allocation2 + $0x130] sm:$0xff]   ;;  %v1307_v14 = vld [vmem:[#allocation2 + $0x178] sm:$0xff]   ;;  %v1311_v20 = vld [vmem:[%s1506_s3] sm:$0xff]  }
  0x27   :  { %1126 = vmatprep.subr.bf16.mxu1 %v1267_v21  ;;  %v1306_v13 = vld [vmem:[#allocation2 + $0x1b0] sm:$0xff]   ;;  %v1308_v15 = vld [vmem:[#allocation2 + $0x1f8] sm:$0xff]   ;;  %v224_v19 = vcombine.high %v208_v18, %v208_v18  ;;  %v1355_v21 = vmov 0.0   ;;  %v1312_v22 = vld [vmem:[%s1506_s3 + $0x8] sm:$0xff]  }
  0x28   :  { %v1309_v16 = vld [vmem:[#allocation2 + $0x138] sm:$0xff]   ;;  %v1313_v23 = vld [vmem:[%s1506_s3 + $0x10] sm:$0xff]   ;;  %v1319_v29 = vld [vmem:[%s1508_s5] sm:$0xff]  }
  0x29   :  { %1105 = vmatpush3.bf16.msra.mxu0 %v1268_v25  ;;  %v1310_v17 = vld [vmem:[#allocation2 + $0x1b8] sm:$0xff]   ;;  %v1315_v25 = vld [vmem:[%s1506_s3 + $0x20] sm:$0xff]   ;;  %v1320_v30 = vld [vmem:[%s1508_s5 + $0x8] sm:$0xff]  }
  0x2a   :  { %1127 = vmatpush3.bf16.msra.mxu1 %v1269_v26  ;;  %1106 = vmatprep.subr.bf16.mxu0 %v1270_v27  ;;  %v1314_v24 = vld [vmem:[%s1506_s3 + $0x18] sm:$0xff]   ;;  %v1316_v26 = vld [vmem:[%s1506_s3 + $0x28] sm:$0xff]   ;;  %v1317_v27 = vld [vmem:[%s1506_s3 + $0x30] sm:$0xff]  }
  0x2b   :  { %1128 = vmatprep.subr.bf16.mxu1 %v1271_v28  ;;  %v1318_v28 = vld [vmem:[%s1506_s3 + $0x38] sm:$0xff]  }
  0x2d   :  { %1107 = vmatpush3.bf16.msra.mxu0 %v1272_v31  ;;  %v1321_v31 = vld [vmem:[%s1508_s5 + $0x10] sm:$0xff]  }
  0x2e   :  { %1129 = vmatpush3.bf16.msra.mxu1 %v1273_v32  ;;  %1108 = vmatprep.subr.bf16.mxu0 %v1274_v33  ;;  %v1322_v32 = vld [vmem:[%s1508_s5 + $0x18] sm:$0xff]   ;;  %v1323_v33 = vld [vmem:[%s1508_s5 + $0x20] sm:$0xff]  }
  0x2f   :  { %1130 = vmatprep.subr.bf16.mxu1 %v1275_v34  ;;  %v1324_v34 = vld [vmem:[%s1508_s5 + $0x28] sm:$0xff]  }
  0x31   :  { %1109 = vmatpush3.bf16.msra.mxu0 %v1276_v36  ;;  %v1011_v36 = vld [vmem:[%s1505_s2] ss:$0 sm:$0xff] }
  0x32   :  { %1131 = vmatpush3.bf16.msra.mxu1 %v1277_v37  ;;  %1138 = vmatprep.subr.bf16.mxu0 %v1279_v41 }
  0x33   :  { %1160 = vmatprep.subr.bf16.mxu1 %v1280_v42 }
  0x34   :  { %652 = vmatmul.mubr.bf16.vlgmr.msra.gmra.mrb[0].mxu0 %v201_v44 }
  0x35   :  { %1139 = vmatpush3.bf16.msra.mxu0 %v1281_v46  ;;  %692 = vmatmul.mubr.bf16.vlgmr.msra.gmra.mrb[0].mxu1 %v223_v50 }
  0x36   :  { %1140 = vmatprep.subr.bf16.mxu0 %v1283_v51  ;;  %1161 = vmatpush3.bf16.msra.mxu1 %v1282_v48 }
  0x37   :  { %731 = vmatprep.mubr.bf16.mxu0 %v222_v54  ;;  %1162 = vmatprep.subr.bf16.mxu1 %v1284_v53 }
  0x38   :  { %771 = vmatprep.mubr.bf16.mxu1 %v226_v57 }
  0x39   :  { %1141 = vmatpush3.bf16.msra.mxu0 %v1285_v55 }
  0x3a   :  { %1142 = vmatprep.subr.bf16.mxu0 %v1287_v58  ;;  %1163 = vmatpush3.bf16.msra.mxu1 %v1286_v56 }
  0x3b   :  { %1164 = vmatprep.subr.bf16.mxu1 %v1288_v59 }
  0x3d   :  { %1143 = vmatpush3.bf16.msra.mxu0 %v1289_v60 }
  0x3e   :  { %1144 = vmatprep.subr.bf16.mxu0 %v1291_v62  ;;  %1165 = vmatpush3.bf16.msra.mxu1 %v1290_v61  ;;  %v1325_v62 = vld [vmem:[%s1508_s5 + $0x30] sm:$0xff]  }
  0x3f   :  { %1166 = vmatprep.subr.bf16.mxu1 %v1292_v63  ;;  %v1326_v63 = vld [vmem:[%s1508_s5 + $0x38] sm:$0xff]  }
  0x41   :  { %1145 = vmatpush3.bf16.msra.mxu0 %v1293_v0  ;;  %v1076_v0 = vld [vmem:[%s1507_s4] ss:$0 sm:$0xff] }
  0x42   :  { %1146 = vmatprep.subr.bf16.mxu0 %v1295_v2  ;;  %1167 = vmatpush3.bf16.msra.mxu1 %v1294_v1 }
  0x43   :  { %1168 = vmatprep.subr.bf16.mxu1 %v1296_v3 }
  0x45   :  { %1147 = vmatpush3.bf16.msra.mxu0 %v1297_v4 }
  0x46   :  { %1148 = vmatprep.subr.bf16.mxu0 %v1299_v6  ;;  %1169 = vmatpush3.bf16.msra.mxu1 %v1298_v5 }
  0x47   :  { %1170 = vmatprep.subr.bf16.mxu1 %v1300_v7 }
  0x49   :  { %1149 = vmatpush3.bf16.msra.mxu0 %v1301_v8  ;;  %v1085_v8 = vld [vmem:[%s1509_s6] ss:$0 sm:$0xff] }
  0x4a   :  { %1150 = vmatprep.subr.bf16.mxu0 %v1303_v10  ;;  %1171 = vmatpush3.bf16.msra.mxu1 %v1302_v9 }
  0x4b   :  { %1172 = vmatprep.subr.bf16.mxu1 %v1304_v11 }
  0x4d   :  { %1151 = vmatpush3.bf16.msra.mxu0 %v1305_v12 }
  0x4e   :  { %1152 = vmatprep.subr.bf16.mxu0 %v1307_v14  ;;  %1173 = vmatpush3.bf16.msra.mxu1 %v1306_v13 }
  0x4f   :  { %1174 = vmatprep.subr.bf16.mxu1 %v1308_v15 }
  0x51   :  { %1153 = vmatpush3.bf16.msra.mxu0 %v1309_v16 }
  0x52   :  { %1175 = vmatpush3.bf16.msra.mxu1 %v1310_v17  ;;  %1200 = vmatprep.subr.bf16.mxu0 %v1355_v21 }
  0x53   :  { %1220 = vmatprep.subr.bf16.mxu1 %v1355_v21 }
  0x54   :  { %732 = vmatmul.mubr.bf16.vlgmr.msra.gmra.mrb[4].mxu0 %v208_v18 }
  0x55   :  { %772 = vmatmul.mubr.bf16.vlgmr.msra.gmra.mrb[4].mxu1 %v224_v19  ;;  %1201 = vmatpush3.bf16.msra.mxu0 %v1311_v20 }
  0x56   :  { %1202 = vmatprep.subr.bf16.mxu0 %v1355_v21  ;;  %1216 = vmatprep.mubr.msk.bf16.mxu0 %vm1356_vm0, %v1355_v21 }
  0x57   :  { %1236 = vmatprep.mubr.msk.bf16.mxu1 %vm1356_vm0, %v1355_v21  ;;  %1221 = vmatpush3.bf16.msra.mxu1 %v1319_v29 }
  0x58   :  { %1222 = vmatprep.subr.bf16.mxu1 %v1355_v21 }
  0x59   :  { %1203 = vmatpush3.bf16.msra.mxu0 %v1312_v22 }
  0x5a   :  { %1204 = vmatprep.subr.bf16.mxu0 %v1355_v21 }
  0x5b   :  { %1223 = vmatpush3.bf16.msra.mxu1 %v1320_v30 }
  0x5c   :  { %1224 = vmatprep.subr.bf16.mxu1 %v1355_v21 }
  0x5d   :  { %1205 = vmatpush3.bf16.msra.mxu0 %v1313_v23 }
  0x5e   :  { %1206 = vmatprep.subr.bf16.mxu0 %v1355_v21 }
  0x5f   :  { %1225 = vmatpush3.bf16.msra.mxu1 %v1321_v31 }
  0x60   :  { %1226 = vmatprep.subr.bf16.mxu1 %v1355_v21 }
  0x61   :  { %1207 = vmatpush3.bf16.msra.mxu0 %v1314_v24 }
  0x62   :  { %1208 = vmatprep.subr.bf16.mxu0 %v1355_v21 }
  0x63   :  { %1227 = vmatpush3.bf16.msra.mxu1 %v1322_v32 }
  0x64   :  { %1228 = vmatprep.subr.bf16.mxu1 %v1355_v21 }
  0x65   :  { %1209 = vmatpush3.bf16.msra.mxu0 %v1315_v25 }
  0x66   :  { %1210 = vmatprep.subr.bf16.mxu0 %v1355_v21 }
  0x67   :  { %1229 = vmatpush3.bf16.msra.mxu1 %v1323_v33 }
  0x68   :  { %1230 = vmatprep.subr.bf16.mxu1 %v1355_v21 }
  0x69   :  { %1211 = vmatpush3.bf16.msra.mxu0 %v1316_v26 }
  0x6a   :  { %1212 = vmatprep.subr.bf16.mxu0 %v1355_v21 }
  0x6b   :  { %1231 = vmatpush3.bf16.msra.mxu1 %v1324_v34 }
  0x6c   :  { %1232 = vmatprep.subr.bf16.mxu1 %v1355_v21 }
  0x6d   :  { %1213 = vmatpush3.bf16.msra.mxu0 %v1317_v27 }
  0x6e   :  { %1214 = vmatprep.subr.bf16.mxu0 %v1355_v21 }
  0x6f   :  { %1233 = vmatpush3.bf16.msra.mxu1 %v1325_v62 }
  0x70   :  { %1234 = vmatprep.subr.bf16.mxu1 %v1355_v21 }
  0x71   :  { %1215 = vmatpush3.bf16.msra.mxu0 %v1318_v28 }
  0x73   :  { %1235 = vmatpush3.bf16.msra.mxu1 %v1326_v63 }
 0x107   :  { %v1110_v35 = vpop.f32.mrb[0].mxu0 }
 0x108   :  { %v1111_v37 = vpop.f32.mrb[1].mxu0  ;;  %v1132_v38 = vpop.f32.mrb[0].mxu1 }
 0x109   :  { %v1112_v39 = vadd.f32 %v1111_v37, %v1110_v35  ;;  %v1113_v40 = vpop.f32.mrb[2].mxu0  ;;  %v1133_v41 = vpop.f32.mrb[1].mxu1 }
 0x10a   :  { %v1114_v42 = vpop.f32.mrb[3].mxu0  ;;  %v1134_v44 = vadd.f32 %v1133_v41, %v1132_v38  ;;  %v1135_v45 = vpop.f32.mrb[2].mxu1 }
 0x10b   :  { %v654_v43 = vadd.f32 %v1112_v39, %v1011_v36  ;;  %v1136_v46 = vpop.f32.mrb[3].mxu1 }
 0x10d   :  { %v694_v47 = vadd.f32 %v1134_v44, %v654_v43 }
 0x127   :  { %v1154_v48 = vpop.f32.mrb[4].mxu0 }
 0x128   :  { %v1155_v49 = vpop.f32.mrb[5].mxu0  ;;  %v1176_v50 = vpop.f32.mrb[4].mxu1 }
 0x129   :  { %v1156_v51 = vadd.f32 %v1155_v49, %v1154_v48  ;;  %v1157_v52 = vpop.f32.mrb[6].mxu0  ;;  %v1177_v53 = vpop.f32.mrb[5].mxu1 }
 0x12a   :  { %v1158_v54 = vpop.f32.mrb[7].mxu0  ;;  %v1178_v56 = vadd.f32 %v1177_v53, %v1176_v50  ;;  %v1179_v57 = vpop.f32.mrb[6].mxu1 }
 0x12b   :  { %v734_v55 = vadd.f32 %v1156_v51, %v694_v47  ;;  %v1180_v58 = vpop.f32.mrb[7].mxu1 }
 0x12d   :  { %v774_v59 = vadd.f32 %v1178_v56, %v734_v55 }
 0x12f   :  { %v779_v60 = vmax.f32 %v774_v59, 0.0 }
 0x131   :  { %v780_v61 = vpack.c.bf16 %v779_v60, %v779_v60 }
 0x133   :  { %1217 = vmatmul.mubr.bf16.vlgmr.msra.gmra.mrb[8].mxu0 %v780_v61 }
 0x206   :  { %v886_v1 = vpop.f32.mrb[8].mxu0 }
 0x207   :  { %v887_v2 = vadd.f32 %v1076_v0, %v886_v1  ;;  %v1218_v3 = vpop.f32.mrb[9].mxu0 }
 0x208   :  { %v889_v4 = vpop.f32.mrb[10].mxu0 }
 0x209   :  { %v892_v5 = vmax.f32 %v887_v2, 0.0  ;;  %v1219_v6 = vpop.f32.mrb[11].mxu0 }
 0x20b   :  { %v893_v7 = vpack.c.bf16 %v892_v5, %v892_v5 }
 0x20d   :  { %1237 = vmatmul.mubr.bf16.vlgmr.msra.gmra.mrb[8].mxu1 %v893_v7 }
 0x2e0   :  { %v999_v9 = vpop.f32.mrb[8].mxu1 }
 0x2e1   :  { %v1000_v10 = vadd.f32 %v1085_v8, %v999_v9  ;;  %v1238_v11 = vpop.f32.mrb[9].mxu1 }
 0x2e2   :  { %v1002_v12 = vpop.f32.mrb[10].mxu1 }
 0x2e3   :  { %1005 = vst [vmem:[%s1510_s7] sm:$0x3] %v1000_v10  ;;  %v1239_v13 = vpop.f32.mrb[11].mxu1 }
 0x2e4   :  { %1010 = vsyncpa [#allocation3], 1 }

</bundles_post_ra>
